<compile_context>
chip_gen: v6e
topology: v6e:2x2x1
jax: 0.10.0
libtpu: 0.0.40
codegen_flags: <defaults>
</compile_context>

<pallas_src>
import jax
import jax.numpy as jnp
from jax.experimental import pallas as pl
from jax.experimental.pallas import tpu as pltpu

LOG_STD_MAX = 2.0
LOG_STD_MIN = -5.0
LOG_STD_SCALE = 0.5 * (LOG_STD_MAX - LOG_STD_MIN)     # 3.5
LOG_STD_OFF = LOG_STD_MIN + LOG_STD_SCALE             # -1.5

OBS_DIM = 2
HIDDEN = 256
ACT_DIM = 2
HEAD_PAD = 128   # lane-dense fused-head matmul width: [mean | log_std | zeros]
OUT_W = 8        # kernel output lanes: [mean(2) | log_std(2) | pad(4)]


def _round_up(x, m):
    return (x + m - 1) // m * m


def _choose_batch_tile(B):
    """Pick a batch tile: big tiles for rollouts, >=2 grid steps for v7x 2-TC."""
    if B > 4096:
        return 2048                               # amortize per-step overhead
    if B > 512:
        return _round_up(pl.cdiv(B, 2), 8)        # keep grid >= 2 for megacore
    return _round_up(max(B, 1), 8)                # single tile (action selection)


def actor_kernel(x_ref, w1_ref, b1_ref, w2_ref, b2_ref, wh_ref, bh_ref,
                 sel_ref, out_ref):
    """One batch tile of the Actor forward.

    x_ref   : (TB, OBS_DIM) f32
    w1_ref  : (OBS_DIM, HIDDEN) f32,   b1_ref : (1, HIDDEN) f32
    w2_ref  : (HIDDEN, HIDDEN) bf16/f32, b2_ref: (1, HIDDEN) f32
    wh_ref  : (HIDDEN, HEAD_PAD) bf16/f32 fused [mean | log_std | 0] heads
    bh_ref  : (1, OUT_W) f32 fused head bias
    sel_ref : (1, OUT_W) f32, 1.0 on log_std lanes (constant across grid steps)
    out_ref : (TB, OUT_W) f32: [:, :2]=mean, [:, 2:4]=squashed log_std
    """
    x = x_ref[...]

    # fc1 + relu: K == 2, so two VPU broadcast FMAs + max (no MXU).
    h = jnp.maximum(
        x[:, 0:1] * w1_ref[0:1, :] + (x[:, 1:2] * w1_ref[1:2, :] + b1_ref[...]),
        0.0)

    # fc2 + relu: the dominant matmul (256x256), MXU with f32 accumulation.
    h = jnp.dot(h.astype(w2_ref.dtype), w2_ref[...],
                preferred_element_type=jnp.float32) + b2_ref[...]
    h = jnp.maximum(h, 0.0)

    # Fused heads: one lane-dense 128-wide MXU push; keep only 8 useful lanes.
    head = jnp.dot(h.astype(wh_ref.dtype), wh_ref[...],
                   preferred_element_type=jnp.float32)
    head8 = head[:, :OUT_W] + bh_ref[...]

    # tanh (EUP) + single-FMA affine on the log_std lanes; the lane selector is
    # a tiny constant VMEM input (no per-step iota+compare).
    squashed = LOG_STD_OFF + LOG_STD_SCALE * jnp.tanh(head8)
    is_logstd = sel_ref[...] > 0.5
    out_ref[...] = jnp.where(is_logstd, squashed, head8).astype(out_ref.dtype)


def prepare_params(params, *, matmul_dtype=jnp.bfloat16):
    """Build kernel-ready params ONCE (fused head slab, 2-D biases, lane mask).

    matmul_dtype=jnp.bfloat16 (default) uses the bf16-native MXU path;
    pass jnp.float32 for exact parity with the reference.
    """
    w1, b1, w2, b2, wm, bm, ws, bs = params
    wh = jnp.zeros((HIDDEN, HEAD_PAD), jnp.float32)
    wh = wh.at[:, :ACT_DIM].set(wm).at[:, ACT_DIM:2 * ACT_DIM].set(ws)
    bh = jnp.zeros((1, OUT_W), jnp.float32)
    bh = bh.at[:, :ACT_DIM].set(bm).at[:, ACT_DIM:2 * ACT_DIM].set(bs)
    sel = jnp.zeros((1, OUT_W), jnp.float32).at[:, ACT_DIM:2 * ACT_DIM].set(1.0)
    return (
        w1.astype(jnp.float32),
        b1.reshape(1, -1).astype(jnp.float32),
        w2.astype(matmul_dtype),
        b2.reshape(1, -1).astype(jnp.float32),
        wh.astype(matmul_dtype),
        bh,
        sel,
    )


def actor_forward(x, prepared, *, batch_tile=None):
    """x: (B, OBS_DIM) f32 -> (mean, log_std), each (B, ACT_DIM) f32."""
    B = x.shape[0]
    w1, b1, w2, b2, wh, bh, sel = prepared

    if batch_tile is None:
        tb = _choose_batch_tile(B)
    else:
        tb = _round_up(max(int(batch_tile), 1), 8)   # enforce (8,128) sublane rule

    b_pad = _round_up(max(B, 1), tb)
    if b_pad != B:
        x = jnp.pad(x, ((0, b_pad - B), (0, 0)))

    grid = (b_pad // tb,)

    in_specs = [
        pl.BlockSpec((tb, OBS_DIM), lambda i: (i, 0)),        # x: tiled over batch
        pl.BlockSpec((OBS_DIM, HIDDEN), lambda i: (0, 0)),    # w1 (VMEM-resident)
        pl.BlockSpec((1, HIDDEN), lambda i: (0, 0)),          # b1
        pl.BlockSpec((HIDDEN, HIDDEN), lambda i: (0, 0)),     # w2
        pl.BlockSpec((1, HIDDEN), lambda i: (0, 0)),          # b2
        pl.BlockSpec((HIDDEN, HEAD_PAD), lambda i: (0, 0)),   # fused head weight
        pl.BlockSpec((1, OUT_W), lambda i: (0, 0)),           # fused head bias
        pl.BlockSpec((1, OUT_W), lambda i: (0, 0)),           # log_std lane selector
    ]
    out_specs = pl.BlockSpec((tb, OUT_W), lambda i: (i, 0))

    out = pl.pallas_call(
        actor_kernel,
        out_shape=jax.ShapeDtypeStruct((b_pad, OUT_W), jnp.float32),
        grid=grid,
        in_specs=in_specs,
        out_specs=out_specs,
        compiler_params=pltpu.CompilerParams(
            dimension_semantics=("parallel",)),
    )(x, w1, b1, w2, b2, wh, bh, sel)

    mean = out[:B, :ACT_DIM]
    log_std = out[:B, ACT_DIM:2 * ACT_DIM]
    return mean, log_std


def init_params(key):
    """Deterministic init matching the torch module's uniform_ ranges."""
    ks = jax.random.split(key, 8)
    u = lambda k, shape, lo, hi: jax.random.uniform(
        k, shape, dtype=jnp.float32, minval=lo, maxval=hi)
    # stored as (in, out) — torch weight is (out, in); semantics identical
    w1 = u(ks[0], (OBS_DIM, HIDDEN), -0.1, 0.1)
    b1 = u(ks[1], (HIDDEN,), -0.1, 0.1)
    w2 = u(ks[2], (HIDDEN, HIDDEN), -0.1, 0.1)
    b2 = u(ks[3], (HIDDEN,), -0.1, 0.1)
    wm = u(ks[4], (HIDDEN, ACT_DIM), -0.01, 0.01)
    bm = u(ks[5], (ACT_DIM,), -0.01, 0.01)
    ws = u(ks[6], (HIDDEN, ACT_DIM), -0.1, 0.1)
    bs = u(ks[7], (ACT_DIM,), -0.1, 0.1)
    return (w1, b1, w2, b2, wm, bm, ws, bs)


def reference_forward(x, params):
    """Pure-JAX reference for correctness check."""
    w1, b1, w2, b2, wm, bm, ws, bs = params
    h = jnp.maximum(x @ w1 + b1, 0.0)
    h = jnp.maximum(h @ w2 + b2, 0.0)
    mean = h @ wm + bm
    log_std = jnp.tanh(h @ ws + bs)
    log_std = LOG_STD_MIN + 0.5 * (LOG_STD_MAX - LOG_STD_MIN) * (log_std + 1.0)
    return mean, log_std


if __name__ == "__main__":
    key = jax.random.PRNGKey(0)
    pkey, xkey = jax.random.split(key)
    params = init_params(pkey)

    # --- exact-parity f32 path (small action-selection batch, single tile) ---
    prepared_f32 = prepare_params(params, matmul_dtype=jnp.float32)
    B = 8
    x = jax.random.normal(xkey, (B, OBS_DIM), dtype=jnp.float32)
    mean, log_std = jax.block_until_ready(actor_forward(x, prepared_f32))
    ref_mean, ref_log_std = reference_forward(x, params)
    assert mean.shape == (B, ACT_DIM) and log_std.shape == (B, ACT_DIM)
    assert jnp.allclose(mean, ref_mean, atol=1e-5, rtol=1e-5)
    assert jnp.allclose(log_std, ref_log_std, atol=1e-5, rtol=1e-5)

    # --- default bf16-MXU path, multi-tile + batch-padding + odd tile size ---
    prepared = prepare_params(params)     # built once, reused across calls
    B2 = 70
    x2 = jax.random.normal(jax.random.PRNGKey(3), (B2, OBS_DIM), dtype=jnp.float32)
    m2, s2 = jax.block_until_ready(actor_forward(x2, prepared, batch_tile=13))
    rm2, rs2 = reference_forward(x2, params)
    assert jnp.allclose(m2, rm2, atol=2e-2, rtol=2e-2)
    assert jnp.allclose(s2, rs2, atol=2e-2, rtol=2e-2)

    # TODO(synk): get_action's Normal.rsample / log_prob epilogue (stochastic
    # sampling via pltpu.prng_* and the action_scale/bias affine) is left
    # outside the kernel to preserve the module's forward() semantics.
    # TODO(synk): for B~1-8 per-env-step latency, weights are still re-DMA'd
    # per call; a cross-call weight-residency (P10) variant is future work.
    print("KERNEL_OK")
</pallas_src>

<mosaic_0001>
module attributes {stable_mosaic.version = 11 : i64} {
  func.func @actor_kernel(%arg0: i32, %arg1: memref<8x2xf32, #tpu.memory_space<vmem>>, %arg2: memref<2x256xf32, #tpu.memory_space<vmem>>, %arg3: memref<1x256xf32, #tpu.memory_space<vmem>>, %arg4: memref<256x256xf32, #tpu.memory_space<vmem>>, %arg5: memref<1x256xf32, #tpu.memory_space<vmem>>, %arg6: memref<256x128xf32, #tpu.memory_space<vmem>>, %arg7: memref<1x8xf32, #tpu.memory_space<vmem>>, %arg8: memref<1x8xf32, #tpu.memory_space<vmem>>, %arg9: memref<8x8xf32, #tpu.memory_space<vmem>>) attributes {dimension_semantics = [#tpu.dimension_semantics<parallel>], iteration_bounds = array<i64: 1>, scalar_prefetch = 0 : i64, scratch_operands = 0 : i64, tpu.core_type = #tpu.core_type<tc>, window_params = [{transform_indices = @transform_0, window_bounds = array<i64: 8, 2>}, {pipeline_mode = #tpu.pipeline_mode<synchronous>, transform_indices = @transform_1, window_bounds = array<i64: 2, 256>}, {pipeline_mode = #tpu.pipeline_mode<synchronous>, transform_indices = @transform_2, window_bounds = array<i64: 1, 256>}, {pipeline_mode = #tpu.pipeline_mode<synchronous>, transform_indices = @transform_3, window_bounds = array<i64: 256, 256>}, {pipeline_mode = #tpu.pipeline_mode<synchronous>, transform_indices = @transform_4, window_bounds = array<i64: 1, 256>}, {pipeline_mode = #tpu.pipeline_mode<synchronous>, transform_indices = @transform_5, window_bounds = array<i64: 256, 128>}, {pipeline_mode = #tpu.pipeline_mode<synchronous>, transform_indices = @transform_6, window_bounds = array<i64: 1, 8>}, {pipeline_mode = #tpu.pipeline_mode<synchronous>, transform_indices = @transform_7, window_bounds = array<i64: 1, 8>}, {transform_indices = @transform_8, window_bounds = array<i64: 8, 8>}]} {
    %c0 = arith.constant 0 : index
    %c0_0 = arith.constant 0 : index
    %0 = vector.load %arg1[%c0, %c0_0] : memref<8x2xf32, #tpu.memory_space<vmem>>, vector<8x2xf32>
    %1 = vector.extract_strided_slice %0 {offsets = [0, 0], sizes = [8, 1], strides = [1, 1]} : vector<8x2xf32> to vector<8x1xf32>
    %c0_1 = arith.constant 0 : index
    %c0_2 = arith.constant 0 : index
    %2 = vector.load %arg2[%c0_1, %c0_2] : memref<2x256xf32, #tpu.memory_space<vmem>>, vector<1x256xf32>
    %3 = vector.broadcast %1 : vector<8x1xf32> to vector<8x256xf32>
    %4 = vector.broadcast %2 : vector<1x256xf32> to vector<8x256xf32>
    %5 = arith.mulf %3, %4 : vector<8x256xf32>
    %6 = vector.extract_strided_slice %0 {offsets = [0, 1], sizes = [8, 1], strides = [1, 1]} : vector<8x2xf32> to vector<8x1xf32>
    %c1 = arith.constant 1 : index
    %c0_3 = arith.constant 0 : index
    %7 = vector.load %arg2[%c1, %c0_3] : memref<2x256xf32, #tpu.memory_space<vmem>>, vector<1x256xf32>
    %8 = vector.broadcast %6 : vector<8x1xf32> to vector<8x256xf32>
    %9 = vector.broadcast %7 : vector<1x256xf32> to vector<8x256xf32>
    %10 = arith.mulf %8, %9 : vector<8x256xf32>
    %c0_4 = arith.constant 0 : index
    %c0_5 = arith.constant 0 : index
    %11 = vector.load %arg3[%c0_4, %c0_5] : memref<1x256xf32, #tpu.memory_space<vmem>>, vector<1x256xf32>
    %12 = vector.broadcast %11 : vector<1x256xf32> to vector<8x256xf32>
    %13 = arith.addf %10, %12 : vector<8x256xf32>
    %14 = arith.addf %5, %13 : vector<8x256xf32>
    %cst = arith.constant 0.000000e+00 : f32
    %15 = vector.broadcast %cst : f32 to vector<8x256xf32>
    %16 = arith.maximumf %14, %15 : vector<8x256xf32>
    %c0_6 = arith.constant 0 : index
    %c0_7 = arith.constant 0 : index
    %17 = vector.load %arg4[%c0_6, %c0_7] : memref<256x256xf32, #tpu.memory_space<vmem>>, vector<256x256xf32>
    %cst_8 = arith.constant dense<0.000000e+00> : vector<8x256xf32>
    %18 = tpu.matmul %16, %17, %cst_8 {dimension_numbers = #tpu.dot_dimension_numbers<[1], [0], [0], [1], [0, 0, 1, 1], [], []>} : vector<8x256xf32>, vector<256x256xf32>, vector<8x256xf32> -> vector<8x256xf32>
    %c0_9 = arith.constant 0 : index
    %c0_10 = arith.constant 0 : index
    %19 = vector.load %arg5[%c0_9, %c0_10] : memref<1x256xf32, #tpu.memory_space<vmem>>, vector<1x256xf32>
    %20 = vector.broadcast %19 : vector<1x256xf32> to vector<8x256xf32>
    %21 = arith.addf %18, %20 : vector<8x256xf32>
    %cst_11 = arith.constant 0.000000e+00 : f32
    %22 = vector.broadcast %cst_11 : f32 to vector<8x256xf32>
    %23 = arith.maximumf %21, %22 : vector<8x256xf32>
    %c0_12 = arith.constant 0 : index
    %c0_13 = arith.constant 0 : index
    %24 = vector.load %arg6[%c0_12, %c0_13] : memref<256x128xf32, #tpu.memory_space<vmem>>, vector<256x128xf32>
    %cst_14 = arith.constant dense<0.000000e+00> : vector<8x128xf32>
    %25 = tpu.matmul %23, %24, %cst_14 {dimension_numbers = #tpu.dot_dimension_numbers<[1], [0], [0], [1], [0, 0, 1, 1], [], []>} : vector<8x256xf32>, vector<256x128xf32>, vector<8x128xf32> -> vector<8x128xf32>
    %26 = vector.extract_strided_slice %25 {offsets = [0, 0], sizes = [8, 8], strides = [1, 1]} : vector<8x128xf32> to vector<8x8xf32>
    %c0_15 = arith.constant 0 : index
    %c0_16 = arith.constant 0 : index
    %27 = vector.load %arg7[%c0_15, %c0_16] : memref<1x8xf32, #tpu.memory_space<vmem>>, vector<1x8xf32>
    %28 = vector.broadcast %27 : vector<1x8xf32> to vector<8x8xf32>
    %29 = arith.addf %26, %28 : vector<8x8xf32>
    %30 = math.tanh %29 : vector<8x8xf32>
    %cst_17 = arith.constant 3.500000e+00 : f32
    %31 = vector.broadcast %cst_17 : f32 to vector<8x8xf32>
    %32 = arith.mulf %31, %30 : vector<8x8xf32>
    %cst_18 = arith.constant -1.500000e+00 : f32
    %33 = vector.broadcast %cst_18 : f32 to vector<8x8xf32>
    %34 = arith.addf %33, %32 : vector<8x8xf32>
    %c0_19 = arith.constant 0 : index
    %c0_20 = arith.constant 0 : index
    %35 = vector.load %arg8[%c0_19, %c0_20] : memref<1x8xf32, #tpu.memory_space<vmem>>, vector<1x8xf32>
    %cst_21 = arith.constant 5.000000e-01 : f32
    %36 = vector.broadcast %cst_21 : f32 to vector<1x8xf32>
    %37 = arith.cmpf ogt, %35, %36 : vector<1x8xf32>
    %38 = vector.shape_cast %37 : vector<1x8xi1> to vector<1x8xi1>
    %39 = vector.broadcast %38 : vector<1x8xi1> to vector<8x8xi1>
    %40 = arith.select %39, %34, %29 : vector<8x8xi1>, vector<8x8xf32>
    %c0_22 = arith.constant 0 : index
    %c0_23 = arith.constant 0 : index
    %41 = vector.load %arg9[%c0_22, %c0_23] : memref<8x8xf32, #tpu.memory_space<vmem>>, vector<8x8xf32>
    tpu.vector_store %arg9[%c0_22, %c0_23], %40 {strides = array<i32>} : memref<8x8xf32, #tpu.memory_space<vmem>>, vector<8x8xf32>,
    return
  }
  func.func @transform_0(%arg0: i32) -> (i32, i32) {
    %c0_i32 = arith.constant 0 : i32
    %c0_i32_0 = arith.constant 0 : i32
    return %arg0, %c0_i32 : i32, i32
  }
  func.func @transform_1(%arg0: i32) -> (i32, i32) {
    %c0_i32 = arith.constant 0 : i32
    %c0_i32_0 = arith.constant 0 : i32
    %c0_i32_1 = arith.constant 0 : i32
    return %c0_i32, %c0_i32_0 : i32, i32
  }
  func.func @transform_2(%arg0: i32) -> (i32, i32) {
    %c0_i32 = arith.constant 0 : i32
    %c0_i32_0 = arith.constant 0 : i32
    %c0_i32_1 = arith.constant 0 : i32
    return %c0_i32, %c0_i32_0 : i32, i32
  }
  func.func @transform_3(%arg0: i32) -> (i32, i32) {
    %c0_i32 = arith.constant 0 : i32
    %c0_i32_0 = arith.constant 0 : i32
    %c0_i32_1 = arith.constant 0 : i32
    return %c0_i32, %c0_i32_0 : i32, i32
  }
  func.func @transform_4(%arg0: i32) -> (i32, i32) {
    %c0_i32 = arith.constant 0 : i32
    %c0_i32_0 = arith.constant 0 : i32
    %c0_i32_1 = arith.constant 0 : i32
    return %c0_i32, %c0_i32_0 : i32, i32
  }
  func.func @transform_5(%arg0: i32) -> (i32, i32) {
    %c0_i32 = arith.constant 0 : i32
    %c0_i32_0 = arith.constant 0 : i32
    %c0_i32_1 = arith.constant 0 : i32
    return %c0_i32, %c0_i32_0 : i32, i32
  }
  func.func @transform_6(%arg0: i32) -> (i32, i32) {
    %c0_i32 = arith.constant 0 : i32
    %c0_i32_0 = arith.constant 0 : i32
    %c0_i32_1 = arith.constant 0 : i32
    return %c0_i32, %c0_i32_0 : i32, i32
  }
  func.func @transform_7(%arg0: i32) -> (i32, i32) {
    %c0_i32 = arith.constant 0 : i32
    %c0_i32_0 = arith.constant 0 : i32
    %c0_i32_1 = arith.constant 0 : i32
    return %c0_i32, %c0_i32_0 : i32, i32
  }
  func.func @transform_8(%arg0: i32) -> (i32, i32) {
    %c0_i32 = arith.constant 0 : i32
    %c0_i32_0 = arith.constant 0 : i32
    return %arg0, %c0_i32 : i32, i32
  }
}

</mosaic_0001>

<bundles_post_ra>
// kernel: tpu_custom_call.1
= control target key start
LH: loop header
LB: loop body
LE: loop exit
PB: predicated region body
PF: predicated region fallthrough
CT: control target
= control target key end

     0   :  { %13 = vsyncpa [#allocation3], 0  ;;  %s622_s0 = inlined_call_operand.vmem [shape: f32[8,2], index: 0, kind: input, shape index: {}]   ;;  %s623_s1 = inlined_call_operand.vmem [shape: f32[2,256], index: 1, kind: input, shape index: {}]   ;;  %s624_s2 = inlined_call_operand.vmem [shape: f32[1,256], index: 2, kind: input, shape index: {}]   ;;  %s625_s3 = inlined_call_operand.hbm [shape: f32[256,256], index: 3, kind: input, shape index: {}]   ;;  %s626_s4 = inlined_call_operand.vmem [shape: f32[1,256], index: 4, kind: input, shape index: {}]   ;;  %s627_s5 = inlined_call_operand.hbm [shape: f32[256,128], index: 5, kind: input, shape index: {}]   ;;  %s628_s6 = inlined_call_operand.vmem [shape: f32[1,8], index: 6, kind: input, shape index: {}]   ;;  %s629_s7 = inlined_call_operand.vmem [shape: f32[1,8], index: 7, kind: input, shape index: {}]   ;;  %s630_s8 = inlined_call_operand.hbm [shape: f32[8,8], index: 8, kind: output, shape index: {}]  }
   0x1   :  { %14 = vsyncpa [#allocation6], 0 }
   0x2   :  { %15 = vsyncpa [#allocation4], 0  ;;  %s521_s27 = smov [#allocation2]  }
   0x3   :  { %s27_s28 = sshll.u32 %s521_s27, 4  ;;  %s28_s28 = int_to_ptr.vmem [resolvable:$true] %s27_s28 }
   0x4   :  { %s463_s29 = scalar_lea.vmem %s28_s28, 8192  ;;  %p468_p1 = scmp.lt.s32.totalorder %s28_s28, %s28_s28 }
   0x5   :  { %p464_p0 = scmp.ne.s32.totalorder %s28_s28, %s463_s29  ;;  %p469_p2 = scmp.lt.s32.totalorder %s463_s29, %s463_s29 }
   0x7   :  { %p470_p3 = por %p469_p2, %p468_p1 }
   0x9   :  { %p471_p4 = pnand %p470_p3, %p464_p0 }
   0xb   :  { %474 = shalt.err (!%p471_p4)
}
   0xc   :  { %s522_s30 = smov 256   ;;  %s523_s9 = smov 16  }
   0xd   :  { %33 = dma.hbm_to_vmem [thread:$0]  %s625_s3, 8192, %s28_s28, [#allocation3], %s522_s30, %s522_s30, %s523_s9  }
   0xe   :  { %s524_s12 = smov [#allocation5]  }
   0xf   :  { %s41_s13 = sshll.u32 %s524_s12, 4  ;;  %s42_s13 = int_to_ptr.vmem [resolvable:$true] %s41_s13 }
  0x10   :  { %s483_s14 = scalar_lea.vmem %s42_s13, 4096  ;;  %p488_p6 = scmp.lt.s32.totalorder %s42_s13, %s42_s13 }
  0x11   :  { %p484_p5 = scmp.ne.s32.totalorder %s42_s13, %s483_s14  ;;  %p489_p7 = scmp.lt.s32.totalorder %s483_s14, %s483_s14 }
  0x13   :  { %p490_p8 = por %p489_p7, %p488_p6 }
  0x15   :  { %p491_p9 = pnand %p490_p8, %p484_p5 }
  0x17   :  { %494 = shalt.err (!%p491_p9)
}
  0x18   :  { %s525_s15 = smov 128   ;;  %s526_s16 = smov 8  }
  0x19   :  { %47 = dma.hbm_to_vmem [thread:$0]  %s627_s5, 4096, %s42_s13, [#allocation6], %s525_s15, %s525_s15, %s526_s16  }
  0x1a   :  { %515 = dma.done.wait [#allocation3], 8192  }
  0x1b   :  { %516 = vsyncadd [#allocation3], 4294959104 }
  0x1c   :  { %517 = dma.done.wait [#allocation6], 4096  }
  0x1d   :  { %518 = vsyncadd [#allocation6], 4294963200  ;;  %v66_v0 = vlaneseq  ;;  %v527_v1 = vmov 1   ;;  %v58_v3 = vld [vmem:[%s622_s0] sm:$0xff]  ;;  %v146_v5 = vld [vmem:[#allocation2 + $0xf8] sm:$0xff]  ;;  %v528_v10 = vmov 0  }
  0x1e   :  { %450 = vset.pattern.permute.xlu0 %v527_v1  ;;  %v377_v4 = vld [vmem:[%s629_s7] sm:$0x1]  ;;  %191 = vmatprep.subr.mxu0 %v146_v5  ;;  %v145_v7 = vld [vmem:[#allocation2 + $0xf0] sm:$0xff]  ;;  %v144_v8 = vld [vmem:[#allocation2 + $0xe8] sm:$0xff]  ;;  %vm386_vm2 = vcmask 64512  }
  0x1f   :  { %v581_v2 = vshrl.u32 %v66_v0, 7  ;;  %81 = vperm.xlu0 %450, %v58_v3   ;;  %vm378_vm0 = vcmp.gt.f32.partialorder %v377_v4, 0.5  ;;  %v143_v9 = vld [vmem:[#allocation2 + $0xe0] sm:$0xff]  ;;  %192 = vmatpush1.msra.mxu0 %v145_v7  ;;  %v142_v12 = vld [vmem:[#allocation2 + $0xd8] sm:$0xff]  ;;  %v141_v14 = vld [vmem:[#allocation2 + $0xd0] sm:$0xff] }
  0x20   :  { %v592_v11 = vsel %vm378_vm0, 1, %v528_v10  ;;  %193 = vmatprep.subr.mxu0 %v144_v8  ;;  %v140_v15 = vld [vmem:[#allocation2 + $0xc8] sm:$0xff]  ;;  %v139_v16 = vld [vmem:[#allocation2 + $0xc0] sm:$0xff]  ;;  %v138_v17 = vld [vmem:[#allocation2 + $0xb8] sm:$0xff] }
  0x21   :  { %v590_v6 = vsub.s32 0, %v581_v2  ;;  %194 = vmatpush1.msra.mxu0 %v143_v9  ;;  %v137_v18 = vld [vmem:[#allocation2 + $0xb0] sm:$0xff]  ;;  %v136_v19 = vld [vmem:[#allocation2 + $0xa8] sm:$0xff]  ;;  %v135_v20 = vld [vmem:[#allocation2 + $0xa0] sm:$0xff] }
  0x22   :  { %195 = vmatprep.subr.mxu0 %v142_v12  ;;  %v134_v21 = vld [vmem:[#allocation2 + $0x98] sm:$0xff]  ;;  %v133_v22 = vld [vmem:[#allocation2 + $0x90] sm:$0xff]  ;;  %v132_v23 = vld [vmem:[#allocation2 + $0x88] sm:$0xff] }
  0x23   :  { %v383_v13 = vrot.slane %v592_v11, %v590_v6  ;;  %451 = vset.pattern.permute.xlu0 %v528_v10  ;;  %196 = vmatpush1.msra.mxu0 %v141_v14  ;;  %v131_v24 = vld [vmem:[#allocation2 + $0x80] sm:$0xff]  ;;  %v130_v25 = vld [vmem:[#allocation2 + $0x78] sm:$0xff]  ;;  %v129_v26 = vld [vmem:[#allocation2 + $0x70] sm:$0xff] }
  0x24   :  { %62 = vperm.xlu0 %451, %v58_v3   ;;  %197 = vmatprep.subr.mxu0 %v140_v15  ;;  %v128_v27 = vld [vmem:[#allocation2 + $0x68] sm:$0xff]  ;;  %v127_v28 = vld [vmem:[#allocation2 + $0x60] sm:$0xff]  ;;  %v126_v29 = vld [vmem:[#allocation2 + $0x58] sm:$0xff] }
  0x25   :  { %198 = vmatpush1.msra.mxu0 %v139_v16  ;;  %v125_v30 = vld [vmem:[#allocation2 + $0x50] sm:$0xff]  ;;  %v124_v31 = vld [vmem:[#allocation2 + $0x48] sm:$0xff]  ;;  %v123_v32 = vld [vmem:[#allocation2 + $0x40] sm:$0xff]  ;;  %vm384_vm1 = vcmp.eq.s32.totalorder %v383_v13, 1 }
  0x26   :  { %199 = vmatprep.subr.mxu0 %v138_v17  ;;  %v122_v33 = vld [vmem:[#allocation2 + $0x38] sm:$0xff]  ;;  %v121_v34 = vld [vmem:[#allocation2 + $0x30] sm:$0xff]  ;;  %v120_v38 = vld [vmem:[#allocation2 + $0x28] sm:$0xff] }
  0x27   :  { %200 = vmatpush1.msra.mxu0 %v137_v18  ;;  %v295_v35 = vld [vmem:[#allocation5 + $0xf8] sm:$0xff]  ;;  %v294_v37 = vld [vmem:[#allocation5 + $0xf0] sm:$0xff]  ;;  %v119_v40 = vld [vmem:[#allocation2 + $0x20] sm:$0xff] }
  0x28   :  { %452 = vset.pattern.permute.xlu0 %v527_v1  ;;  %201 = vmatprep.subr.mxu0 %v136_v19  ;;  %v279_v36 = vld [vmem:[#allocation5 + $0x78] sm:$0xff]  ;;  %v278_v39 = vld [vmem:[#allocation5 + $0x70] sm:$0xff]  ;;  %v293_v41 = vld [vmem:[#allocation5 + $0xe8] sm:$0xff] }
  0x29   :  { %202 = vmatpush1.msra.mxu0 %v135_v20  ;;  %406 = vmatprep.subr.mxu1 %v295_v35  ;;  %v118_v42 = vld [vmem:[#allocation2 + $0x18] sm:$0xff]  ;;  %v277_v43 = vld [vmem:[#allocation5 + $0x68] sm:$0xff]  ;;  %v117_v44 = vld [vmem:[#allocation2 + $0x10] sm:$0xff] }
  0x2a   :  { %203 = vmatprep.subr.mxu0 %v134_v21  ;;  %407 = vmatpush3.msra.mxu1 %v279_v36  ;;  %v292_v45 = vld [vmem:[#allocation5 + $0xe0] sm:$0xff]  ;;  %v116_v46 = vld [vmem:[#allocation2 + $0x8] sm:$0xff]  ;;  %v291_v49 = vld [vmem:[#allocation5 + $0xd8] sm:$0xff] }
  0x2b   :  { %204 = vmatpush1.msra.mxu0 %v133_v22  ;;  %408 = vmatprep.subr.mxu1 %v294_v37  ;;  %v276_v47 = vld [vmem:[#allocation5 + $0x60] sm:$0xff]  ;;  %v178_v50 = vld [vmem:[#allocation2 + $0x1f8] sm:$0xff]  ;;  %v177_v52 = vld [vmem:[#allocation2 + $0x1f0] sm:$0xff]  ;;  %v72_v37 = vsub.s32 1, %v581_v2 }
  0x2c   :  { %205 = vmatprep.subr.mxu0 %v132_v23  ;;  %409 = vmatpush3.msra.mxu1 %v278_v39  ;;  %v115_v48 = vld [vmem:[#allocation2] sm:$0xff]  ;;  %v275_v51 = vld [vmem:[#allocation5 + $0x58] sm:$0xff]  ;;  %v290_v53 = vld [vmem:[#allocation5 + $0xd0] sm:$0xff] }
  0x2d   :  { %206 = vmatpush1.msra.mxu0 %v131_v24  ;;  %410 = vmatprep.subr.mxu1 %v293_v41  ;;  %v176_v54 = vld [vmem:[#allocation2 + $0x1e8] sm:$0xff]  ;;  %v274_v55 = vld [vmem:[#allocation5 + $0x50] sm:$0xff]  ;;  %v175_v56 = vld [vmem:[#allocation2 + $0x1e0] sm:$0xff] }
  0x2e   :  { %207 = vmatprep.subr.mxu0 %v130_v25  ;;  %411 = vmatpush3.msra.mxu1 %v277_v43  ;;  %v289_v57 = vld [vmem:[#allocation5 + $0xc8] sm:$0xff]  ;;  %v174_v58 = vld [vmem:[#allocation2 + $0x1d8] sm:$0xff]  ;;  %v173_v60 = vld [vmem:[#allocation2 + $0x1d0] sm:$0xff] }
  0x2f   :  { %208 = vmatpush1.msra.mxu0 %v129_v26  ;;  %412 = vmatprep.subr.mxu1 %v292_v45  ;;  %v273_v59 = vld [vmem:[#allocation5 + $0x48] sm:$0xff]  ;;  %v288_v61 = vld [vmem:[#allocation5 + $0xc0] sm:$0xff]  ;;  %v287_v1 = vld [vmem:[#allocation5 + $0xb8] sm:$0xff] }
  0x30   :  { %209 = vmatprep.subr.mxu0 %v128_v27  ;;  %413 = vmatpush3.msra.mxu1 %v276_v47  ;;  %v172_v62 = vld [vmem:[#allocation2 + $0x1c8] sm:$0xff]  ;;  %v272_v63 = vld [vmem:[#allocation5 + $0x40] sm:$0xff]  ;;  %v170_v3 = vld [vmem:[#allocation2 + $0x1b8] sm:$0xff] }
  0x31   :  { %210 = vmatpush1.msra.mxu0 %v127_v28  ;;  %414 = vmatprep.subr.mxu1 %v291_v49  ;;  %v171_v0 = vld [vmem:[#allocation2 + $0x1c0] sm:$0xff]  ;;  %v271_v4 = vld [vmem:[#allocation5 + $0x38] sm:$0xff]  ;;  %v169_v5 = vld [vmem:[#allocation2 + $0x1b0] sm:$0xff] }
  0x32   :  { %211 = vmatprep.subr.mxu0 %v126_v29  ;;  %415 = vmatpush3.msra.mxu1 %v275_v51  ;;  %v286_v7 = vld [vmem:[#allocation5 + $0xb0] sm:$0xff]  ;;  %v168_v8 = vld [vmem:[#allocation2 + $0x1a8] sm:$0xff]  ;;  %v167_v10 = vld [vmem:[#allocation2 + $0x1a0] sm:$0xff] }
  0x33   :  { %212 = vmatpush1.msra.mxu0 %v125_v30  ;;  %416 = vmatprep.subr.mxu1 %v290_v53  ;;  %v270_v9 = vld [vmem:[#allocation5 + $0x30] sm:$0xff]  ;;  %v285_v12 = vld [vmem:[#allocation5 + $0xa8] sm:$0xff]  ;;  %v166_v14 = vld [vmem:[#allocation2 + $0x198] sm:$0xff] }
  0x34   :  { %213 = vmatprep.subr.mxu0 %v124_v31  ;;  %417 = vmatpush3.msra.mxu1 %v274_v55  ;;  %v269_v15 = vld [vmem:[#allocation5 + $0x28] sm:$0xff]  ;;  %v165_v16 = vld [vmem:[#allocation2 + $0x190] sm:$0xff]  ;;  %v284_v17 = vld [vmem:[#allocation5 + $0xa0] sm:$0xff] }
  0x35   :  { %214 = vmatpush1.msra.mxu0 %v123_v32  ;;  %418 = vmatprep.subr.mxu1 %v289_v57  ;;  %v164_v18 = vld [vmem:[#allocation2 + $0x188] sm:$0xff]  ;;  %v268_v19 = vld [vmem:[#allocation5 + $0x20] sm:$0xff]  ;;  %v162_v21 = vld [vmem:[#allocation2 + $0x178] sm:$0xff] }
  0x36   :  { %215 = vmatprep.subr.mxu0 %v122_v33  ;;  %419 = vmatpush3.msra.mxu1 %v273_v59  ;;  %v163_v20 = vld [vmem:[#allocation2 + $0x180] sm:$0xff]  ;;  %v161_v22 = vld [vmem:[#allocation2 + $0x170] sm:$0xff]  ;;  %v160_v23 = vld [vmem:[#allocation2 + $0x168] sm:$0xff] }
  0x37   :  { %216 = vmatpush1.msra.mxu0 %v121_v34  ;;  %420 = vmatprep.subr.mxu1 %v288_v61  ;;  %v159_v24 = vld [vmem:[#allocation2 + $0x160] sm:$0xff]  ;;  %v158_v25 = vld [vmem:[#allocation2 + $0x158] sm:$0xff]  ;;  %v157_v26 = vld [vmem:[#allocation2 + $0x150] sm:$0xff] }
  0x38   :  { %217 = vmatprep.subr.mxu0 %v120_v38  ;;  %421 = vmatpush3.msra.mxu1 %v272_v63  ;;  %v156_v27 = vld [vmem:[#allocation2 + $0x148] sm:$0xff]  ;;  %v155_v28 = vld [vmem:[#allocation2 + $0x140] sm:$0xff]  ;;  %v154_v29 = vld [vmem:[#allocation2 + $0x138] sm:$0xff] }
  0x39   :  { %218 = vmatpush1.msra.mxu0 %v119_v40  ;;  %422 = vmatprep.subr.mxu1 %v287_v1  ;;  %v153_v30 = vld [vmem:[#allocation2 + $0x130] sm:$0xff]  ;;  %v152_v31 = vld [vmem:[#allocation2 + $0x128] sm:$0xff]  ;;  %v151_v32 = vld [vmem:[#allocation2 + $0x120] sm:$0xff] }
  0x3a   :  { %219 = vmatprep.subr.mxu0 %v118_v42  ;;  %423 = vmatpush3.msra.mxu1 %v271_v4  ;;  %v150_v33 = vld [vmem:[#allocation2 + $0x118] sm:$0xff]  ;;  %v149_v34 = vld [vmem:[#allocation2 + $0x110] sm:$0xff]  ;;  %v148_v35 = vld [vmem:[#allocation2 + $0x108] sm:$0xff] }
  0x3b   :  { %220 = vmatpush1.msra.mxu0 %v117_v44  ;;  %424 = vmatprep.subr.mxu1 %v286_v7  ;;  %v147_v36 = vld [vmem:[#allocation2 + $0x100] sm:$0xff]  ;;  %v267_v59 = vld [vmem:[#allocation5 + $0x18] sm:$0xff]  ;;  %v266_v61 = vld [vmem:[#allocation5 + $0x10] sm:$0xff] }
  0x3c   :  { %221 = vmatprep.subr.mxu0 %v116_v46  ;;  %425 = vmatpush3.msra.mxu1 %v270_v9  ;;  %v404_v38 = vld [vmem:[%s623_s1 + $0x1] ss:$2 sm:$0x3]  ;;  %v59_v42 = vld [vmem:[%s623_s1] ss:$2 sm:$0x3] }
  0x3d   :  { %222 = vmatpush1.msra.mxu0 %v115_v48  ;;  %426 = vmatprep.subr.mxu1 %v285_v12  ;;  %v88_v39 = vrot.slane %v404_v38, %v590_v6  ;;  %v92_v40 = vrot.slane %v404_v38, %v72_v37  ;;  %v97_v41 = vld [vmem:[%s624_s2] sm:$0x3]  ;;  %v69_v47 = vrot.slane %v59_v42, %v590_v6  ;;  %v265_v63 = vld [vmem:[#allocation5 + $0x8] sm:$0xff] }
  0x3e   :  { %223 = vmatprep.subr.mxu0 %v178_v50  ;;  %427 = vmatpush3.msra.mxu1 %v269_v15  ;;  %v102_v44 = vrot.slane %v97_v41, %v590_v6  ;;  %v106_v45 = vrot.slane %v97_v41, %v72_v37  ;;  %v73_v48 = vrot.slane %v59_v42, %v72_v37  ;;  %v264_v1 = vld [vmem:[#allocation5] sm:$0xff] }
  0x3f   :  { %224 = vmatpush2.msra.mxu0 %v177_v52  ;;  %428 = vmatprep.subr.mxu1 %v284_v17  ;;  %v405_v17 = vld [vmem:[%s628_s6] ss:$0 sm:$0xff] }
  0x40   :  { %225 = vmatprep.subr.mxu0 %v176_v54  ;;  %429 = vmatpush3.msra.mxu1 %v268_v19 }
  0x41   :  { %226 = vmatpush2.msra.mxu0 %v175_v56 }
  0x42   :  { %227 = vmatprep.subr.mxu0 %v174_v58  ;;  %v283_v58 = vld [vmem:[#allocation5 + $0x98] sm:$0xff] }
  0x43   :  { %228 = vmatpush2.msra.mxu0 %v173_v60  ;;  %430 = vmatprep.subr.mxu1 %v283_v58  ;;  %v282_v60 = vld [vmem:[#allocation5 + $0x90] sm:$0xff] }
  0x44   :  { %229 = vmatprep.subr.mxu0 %v172_v62  ;;  %431 = vmatpush3.msra.mxu1 %v267_v59  ;;  %v281_v62 = vld [vmem:[#allocation5 + $0x88] sm:$0xff] }
  0x45   :  { %230 = vmatpush2.msra.mxu0 %v171_v0  ;;  %432 = vmatprep.subr.mxu1 %v282_v60  ;;  %v280_v0 = vld [vmem:[#allocation5 + $0x80] sm:$0xff] }
  0x46   :  { %231 = vmatprep.subr.mxu0 %v170_v3  ;;  %433 = vmatpush3.msra.mxu1 %v266_v61  ;;  %v179_v3 = vld [vmem:[%s626_s4] sm:$0x3]  ;;  %s529_s4 = smov [#allocation7]  }
  0x47   :  { %232 = vmatpush2.msra.mxu0 %v169_v5  ;;  %434 = vmatprep.subr.mxu1 %v281_v62  ;;  %v184_v4 = vrot.slane %v179_v3, %v590_v6  ;;  %v188_v5 = vrot.slane %v179_v3, %v72_v37  ;;  %s394_s27 = sshll.u32 %s529_s4, 4  ;;  %s395_s27 = int_to_ptr.vmem [resolvable:$true] %s394_s27 }
  0x48   :  { %233 = vmatprep.subr.mxu0 %v168_v8  ;;  %435 = vmatpush3.msra.mxu1 %v265_v63  ;;  %s495_s28 = scalar_lea.vmem %s395_s27, 128  ;;  %p500_p11 = scmp.lt.s32.totalorder %s395_s27, %s395_s27 }
  0x49   :  { %234 = vmatpush2.msra.mxu0 %v167_v10  ;;  %436 = vmatprep.subr.mxu1 %v280_v0  ;;  %p496_p10 = scmp.ne.s32.totalorder %s395_s27, %s495_s28  ;;  %p501_p12 = scmp.lt.s32.totalorder %s495_s28, %s495_s28 }
  0x4a   :  { %235 = vmatprep.subr.mxu0 %v166_v14  ;;  %437 = vmatpush3.msra.mxu1 %v264_v1 }
  0x4b   :  { %236 = vmatpush2.msra.mxu0 %v165_v16  ;;  %p502_p13 = por %p501_p12, %p500_p11 }
  0x4c   :  { %237 = vmatprep.subr.mxu0 %v164_v18 }
  0x4d   :  { %238 = vmatpush2.msra.mxu0 %v163_v20  ;;  %p503_p0 = pnand %p502_p13, %p496_p10 }
  0x4e   :  { %239 = vmatprep.subr.mxu0 %v162_v21 }
  0x4f   :  { %240 = vmatpush2.msra.mxu0 %v161_v22 }
  0x50   :  { %241 = vmatprep.subr.mxu0 %v160_v23 }
  0x51   :  { %242 = vmatpush2.msra.mxu0 %v159_v24 }
  0x52   :  { %243 = vmatprep.subr.mxu0 %v158_v25 }
  0x53   :  { %244 = vmatpush2.msra.mxu0 %v157_v26 }
  0x54   :  { %245 = vmatprep.subr.mxu0 %v156_v27 }
  0x55   :  { %246 = vmatpush2.msra.mxu0 %v155_v28 }
  0x56   :  { %247 = vmatprep.subr.mxu0 %v154_v29 }
  0x57   :  { %248 = vmatpush2.msra.mxu0 %v153_v30 }
  0x58   :  { %249 = vmatprep.subr.mxu0 %v152_v31 }
  0x59   :  { %250 = vmatpush2.msra.mxu0 %v151_v32 }
  0x5a   :  { %251 = vmatprep.subr.mxu0 %v150_v33 }
  0x5b   :  { %252 = vmatpush2.msra.mxu0 %v149_v34 }
  0x5c   :  { %253 = vmatprep.subr.mxu0 %v148_v35 }
  0x5d   :  { %254 = vmatpush2.msra.mxu0 %v147_v36 }
  0x9a   :  { %v82_v43 = vpop.permute.xlu0 %81 }
  0x9b   :  { %v95_v2 = vmul.f32 %v88_v39, %v82_v43  ;;  %v96_v46 = vmul.f32 %v92_v40, %v82_v43 }
  0x9d   :  { %v109_v50 = vadd.f32 %v102_v44, %v95_v2  ;;  %v110_v53 = vadd.f32 %v106_v45, %v96_v46 }
  0x9f   :  { %v63_v49 = vpop.permute.xlu0 %62 }
  0xa0   :  { %v76_v51 = vmul.f32 %v69_v47, %v63_v49  ;;  %v77_v52 = vmul.f32 %v73_v48, %v63_v49 }
  0xa2   :  { %v111_v54 = vadd.f32 %v109_v50, %v76_v51  ;;  %v112_v55 = vadd.f32 %v110_v53, %v77_v52 }
  0xa4   :  { %v113_v56 = vmax.f32 %v111_v54, 0.0  ;;  %v114_v57 = vmax.f32 %v112_v55, 0.0 }
  0xa6   :  { %255 = vmatprep.mubr.f32.mxu0 %v114_v57 }
  0xa7   :  { %256 = vmatmul.mubr.f32.vlgmr.msra.gmra.mxu0 %v113_v56 }
 0x167   :  { %v257_v7 = vpop.f32.mrf.mxu0 }
 0x168   :  { %v258_v8 = vadd.f32 %v257_v7, %v184_v4 }
 0x169   :  { %v259_v9 = vpop.f32.mrf.mxu0 }
 0x16a   :  { %v260_v10 = vadd.f32 %v259_v9, %v188_v5  ;;  %v262_v14 = vmax.f32 %v258_v8, 0.0 }
 0x16c   :  { %v263_v12 = vmax.f32 %v260_v10, 0.0 }
 0x16e   :  { %360 = vmatprep.mubr.f32.mxu1 %v263_v12 }
 0x16f   :  { %361 = vmatmul.mubr.f32.vlgmr.msra.gmra.mxu1 %v262_v14 }
 0x22f   :  { %v438_v15 = vpop.f32.mrf.mxu1 }
 0x231   :  { %v439_v16 = vpop.f32.mrf.mxu1 }
 0x232   :  { %v440_v18 = vadd.f32 %v439_v16, %v438_v15 }
 0x234   :  { %v373_v19 = vadd.f32 %v440_v18, %v405_v17 }
 0x236   :  { %453 = vtanh.f32 %v373_v19 }
 0x243   :  { %v454_v20 = vpop.eup %453 }
 0x244   :  { %v375_v21 = vmul.f32 3.5, %v454_v20 }
 0x246   :  { %v376_v22 = vadd.f32 -1.5, %v375_v21 }
 0x248   :  { %v385_v23 = vsel %vm384_vm1, %v376_v22, %v373_v19 }
 0x249   :  { %387 = vst.msk [vmem:[#allocation7] sm:$0xff] %vm386_vm2, %v385_v23 }
 0x24a   :  { %506 = shalt.err (!%p503_p0)
}
 0x24b   :  { %397 = dma.vmem_to_hbm [thread:$0]  %s395_s27, 128, %s630_s8, [#allocation4]  }
 0x24c   :  { %519 = dma.done.wait [#allocation4], 128  }
 0x24d   :  { %520 = vsyncadd [#allocation4], 4294967168 }
 0x24e   :  { %401 = vsyncpa [#allocation3], 1 }
 0x24f   :  { %402 = vsyncpa [#allocation6], 1 }
 0x250   :  { %403 = vsyncpa [#allocation4], 1 }

</bundles_post_ra>
